<compile_context>
chip_gen: v7x
topology: tpu7x:2x2x1
jax: 0.10.0
libtpu: 0.0.40
codegen_flags: <defaults>
</compile_context>

<pallas_src>
import functools

import jax
import jax.numpy as jnp
from jax.experimental import pallas as pl
from jax.experimental.pallas import tpu as pltpu


def _round_up(x, m):
    return ((x + m - 1) // m) * m


def _vmem_capacity_bytes():
    # Physical per-core VMEM (128 MiB on v5e/v6e, 64 MiB on v7x).  Fall back
    # to the conservative v7x figure if the query is unavailable.
    try:
        return int(pltpu.get_tpu_info().vmem_capacity_bytes)
    except Exception:
        return 64 * 1024 * 1024


def _tiling_params(M):
    cap = _vmem_capacity_bytes()
    vmem_limit = min((cap * 3) // 4, 96 * 1024 * 1024)   # ~48 MiB on v7x
    m_cap = 1024 if cap >= 96 * 1024 * 1024 else 512     # bigger tiles on v5e/v6e
    # Guarantee >= 2 M tiles so v7x's two TensorCores both get work on the
    # "parallel" axis (harmless extra grid step on 1-TC chips).
    tile_m = min(m_cap, _round_up(max((M + 1) // 2, 16), 16))
    Mp = _round_up(M, tile_m)
    return tile_m, Mp, Mp // tile_m, vmem_limit


def _compiler_params(semantics, vmem_limit):
    return pltpu.CompilerParams(dimension_semantics=semantics,
                                vmem_limit_bytes=vmem_limit)


# ---------------------------------------------------------------------------
# Pass-1 kernels: conv -> bf16 y tile + per-tile BN partial statistics
# ---------------------------------------------------------------------------
def _emit_y_and_stats(y_ref, stats_ref, acc_ref):
    # Store y first; feed the reductions from separate VMEM reads of the f32
    # accumulator (no large live value across the store) and write the two
    # stats rows directly -- no concatenate.
    y_ref[...] = acc_ref[...].astype(y_ref.dtype)
    stats_ref[0, 0:1, :] = jnp.sum(acc_ref[...], axis=0, keepdims=True)
    yf = acc_ref[...]
    stats_ref[0, 1:2, :] = jnp.sum(yf * yf, axis=0, keepdims=True)


def _dense_conv_stats_kernel(col_ref, w_ref, y_ref, stats_ref, acc_ref):
    kstep = pl.program_id(1)

    @pl.when(kstep == 0)
    def _():
        acc_ref[...] = jnp.zeros_like(acc_ref)

    # bf16 x bf16 -> f32 accumulation on the MXU.
    acc_ref[...] += jnp.dot(col_ref[...], w_ref[...],
                            preferred_element_type=jnp.float32)

    @pl.when(kstep == pl.num_programs(1) - 1)
    def _():
        _emit_y_and_stats(y_ref, stats_ref, acc_ref)


def _dw_conv_stats_kernel(tap_ref, w_ref, y_ref, stats_ref, acc_ref):
    t = pl.program_id(1)

    @pl.when(t == 0)
    def _():
        acc_ref[...] = jnp.zeros_like(acc_ref)

    # Depthwise tap MAC on the VPU: bf16 slab from HBM, f32 math (portable to
    # v5e, which has no bf16 VALU).
    acc_ref[...] += tap_ref[0].astype(jnp.float32) * w_ref[0]

    @pl.when(t == pl.num_programs(1) - 1)
    def _():
        _emit_y_and_stats(y_ref, stats_ref, acc_ref)


# ---------------------------------------------------------------------------
# Pass-2 kernel: fused normalize + affine + PReLU  (out = y*scale + bias)
# ---------------------------------------------------------------------------
def _norm_act_kernel(y_ref, scale_ref, bias_ref, alpha_ref, o_ref, *, linear):
    out = y_ref[...].astype(jnp.float32) * scale_ref[...] + bias_ref[...]
    if not linear:
        out = jnp.where(out > 0, out, alpha_ref[...] * out)
    o_ref[...] = out.astype(o_ref.dtype)


def _bn_act_pass(y, stats, gamma, beta, alpha, *, m_real, cout, cp, mp, tile_m,
                 n_tiles, linear, eps, vmem_limit):
    # Tiny cross-tile reduce + per-channel scale/bias precompute (f32, O(Cout)).
    tot = jnp.sum(stats, axis=0)                                   # (2, Cp)
    mean = tot[0] / m_real
    var = jnp.maximum(tot[1] / m_real - mean * mean, 0.0)          # guard cancellation
    gamma_p = jnp.pad(gamma.astype(jnp.float32), (0, cp - cout))
    beta_p = jnp.pad(beta.astype(jnp.float32), (0, cp - cout))
    alpha_p = jnp.pad(alpha.astype(jnp.float32), (0, cp - cout))
    scale = gamma_p * jax.lax.rsqrt(var + eps)                     # one rsqrt/channel
    bias = beta_p - mean * scale

    return pl.pallas_call(
        functools.partial(_norm_act_kernel, linear=linear),
        out_shape=jax.ShapeDtypeStruct((mp, cp), jnp.float32),
        grid=(n_tiles,),
        in_specs=[pl.BlockSpec((tile_m, cp), lambda i: (i, 0)),
                  pl.BlockSpec((1, cp), lambda i: (0, 0)),
                  pl.BlockSpec((1, cp), lambda i: (0, 0)),
                  pl.BlockSpec((1, cp), lambda i: (0, 0))],
        out_specs=pl.BlockSpec((tile_m, cp), lambda i: (i, 0)),
        compiler_params=_compiler_params(("parallel",), vmem_limit),
    )(y, scale.reshape(1, cp), bias.reshape(1, cp), alpha_p.reshape(1, cp))


# ---------------------------------------------------------------------------
# Wrapper: layout glue + the two Pallas passes
# ---------------------------------------------------------------------------
def conv_block_forward(x_nchw, weight, gamma, beta, alpha,
                       *, k, s, p, dw=False, linear=False, eps=1e-5):
    N, Cin, H, W = x_nchw.shape
    Cout = weight.shape[0]
    Ho = (H + 2 * p - k) // s + 1
    Wo = (W + 2 * p - k) // s + 1
    M = N * Ho * Wo

    Cp = _round_up(Cout, 128)                     # lane-dense output / MXU N dim
    tile_m, Mp, n_tiles, vmem_limit = _tiling_params(M)

    # NCHW -> NHWC (bf16 feed from HBM), spatial zero pad.
    x = jnp.transpose(x_nchw, (0, 2, 3, 1)).astype(jnp.bfloat16)
    xp = jnp.pad(x, ((0, 0), (p, p), (p, p), (0, 0)))

    def tap_slices(arr, c):
        slabs = []
        for kh in range(k):
            for kw in range(k):
                slabs.append(jax.lax.slice(
                    arr, (0, kh, kw, 0),
                    (N, kh + (Ho - 1) * s + 1, kw + (Wo - 1) * s + 1, c),
                    (1, s, s, 1)).reshape(M, c))
        return slabs

    y_stats_shapes = (jax.ShapeDtypeStruct((Mp, Cp), jnp.bfloat16),
                      jax.ShapeDtypeStruct((n_tiles, 2, Cp), jnp.float32))
    y_spec = pl.BlockSpec((tile_m, Cp), lambda i, j: (i, 0))
    stats_spec = pl.BlockSpec((1, 2, Cp), lambda i, j: (i, 0, 0))
    acc_scratch = pltpu.VMEM((tile_m, Cp), jnp.float32)

    if dw:
        # Depthwise (groups = Cin): output channel o reads input channel o // mult.
        assert Cout % Cin == 0, "depthwise requires Cout % Cin == 0"
        mult = Cout // Cin
        kk = k * k
        x_exp = jnp.repeat(xp, mult, axis=-1)                    # (N,Hp,Wp,Cout) bf16
        taps = jnp.stack(tap_slices(x_exp, Cout), axis=0)        # (kk, M, Cout) bf16
        taps = jnp.pad(taps, ((0, 0), (0, Mp - M), (0, Cp - Cout)))
        w_tap = jnp.transpose(weight[:, 0].reshape(Cout, kk), (1, 0))   # (kk, Cout)
        w_tap = jnp.pad(w_tap, ((0, 0), (0, Cp - Cout)))
        w_tap = w_tap.reshape(kk, 1, Cp).astype(jnp.float32)

        y, stats = pl.pallas_call(
            _dw_conv_stats_kernel,
            out_shape=y_stats_shapes,
            grid=(n_tiles, kk),
            in_specs=[pl.BlockSpec((1, tile_m, Cp), lambda i, t: (t, i, 0)),
                      pl.BlockSpec((1, 1, Cp), lambda i, t: (t, 0, 0))],
            out_specs=(y_spec, stats_spec),
            scratch_shapes=[acc_scratch],
            compiler_params=_compiler_params(("parallel", "arbitrary"), vmem_limit),
        )(taps, w_tap)
    else:
        K = k * k * Cin
        Kp = _round_up(K, 128)                 # full MXU contraction dim
        tk = 512 if Kp % 512 == 0 else (256 if Kp % 256 == 0 else 128)
        n_k = Kp // tk
        # im2col (M, K) in bf16, tap order (kh, kw, ci); pad M/K.
        col = jnp.concatenate(tap_slices(xp, Cin), axis=-1)
        col = jnp.pad(col, ((0, Mp - M), (0, Kp - K)))
        # Weight (Cout, Cin, k, k) -> (K, Cout), matching tap order; pad + bf16.
        w2d = jnp.transpose(weight, (2, 3, 1, 0)).reshape(K, Cout)
        w2d = jnp.pad(w2d, ((0, Kp - K), (0, Cp - Cout))).astype(jnp.bfloat16)

        y, stats = pl.pallas_call(
            _dense_conv_stats_kernel,
            out_shape=y_stats_shapes,
            grid=(n_tiles, n_k),
            in_specs=[pl.BlockSpec((tile_m, tk), lambda i, j: (i, j)),
                      pl.BlockSpec((tk, Cp), lambda i, j: (j, 0))],
            out_specs=(y_spec, stats_spec),
            scratch_shapes=[acc_scratch],
            compiler_params=_compiler_params(("parallel", "arbitrary"), vmem_limit),
        )(col, w2d)

    out2d = _bn_act_pass(y, stats, gamma, beta, alpha, m_real=M, cout=Cout,
                         cp=Cp, mp=Mp, tile_m=tile_m, n_tiles=n_tiles,
                         linear=linear, eps=eps, vmem_limit=vmem_limit)

    out = out2d[:M, :Cout].reshape(N, Ho, Wo, Cout)
    return jnp.transpose(out, (0, 3, 1, 2))


# ---------------------------------------------------------------------------
# Pure-JAX reference for verification
# ---------------------------------------------------------------------------
def reference_forward(x, weight, gamma, beta, alpha,
                      *, k, s, p, dw=False, linear=False, eps=1e-5,
                      conv_dtype=jnp.float32):
    groups = x.shape[1] if dw else 1
    y = jax.lax.conv_general_dilated(
        x.astype(conv_dtype), weight.astype(conv_dtype), (s, s),
        [(p, p), (p, p)],
        dimension_numbers=('NCHW', 'OIHW', 'NCHW'),
        feature_group_count=groups,
        preferred_element_type=jnp.float32).astype(jnp.float32)
    mean = jnp.mean(y, axis=(0, 2, 3), keepdims=True)
    var = jnp.var(y, axis=(0, 2, 3), keepdims=True)   # biased, like PyTorch train BN
    out = (y - mean) * jax.lax.rsqrt(var + eps)
    out = out * gamma.reshape(1, -1, 1, 1) + beta.reshape(1, -1, 1, 1)
    if linear:
        return out
    return jnp.where(out > 0, out, alpha.reshape(1, -1, 1, 1) * out)


# ---------------------------------------------------------------------------
if __name__ == "__main__":
    key = jax.random.PRNGKey(0)
    k1, k2, k3, k4, k5 = jax.random.split(key, 5)

    N, Cin, H, W = 2, 4, 16, 16
    Cout, ksz, stride, pad = 8, 3, 1, 1

    x = jax.random.normal(k1, (N, Cin, H, W), jnp.float32)
    w = 0.1 * jax.random.normal(k2, (Cout, Cin, ksz, ksz), jnp.float32)
    gamma = 1.0 + 0.1 * jax.random.normal(k3, (Cout,), jnp.float32)
    beta = 0.1 * jax.random.normal(k4, (Cout,), jnp.float32)
    alpha = jnp.full((Cout,), 0.25, jnp.float32)          # PReLU default init

    # Case 1: dense conv + BN + PReLU (bf16 MXU path, bf16 inter-pass y).
    out = jax.block_until_ready(conv_block_forward(
        x, w, gamma, beta, alpha, k=ksz, s=stride, p=pad, dw=False, linear=False))
    ref = reference_forward(x, w, gamma, beta, alpha, k=ksz, s=stride, p=pad,
                            dw=False, linear=False, conv_dtype=jnp.bfloat16)
    assert out.shape == (N, Cout, H, W), out.shape
    assert jnp.allclose(out, ref, atol=3e-2, rtol=3e-2), \
        float(jnp.max(jnp.abs(out - ref)))

    # Case 2: depthwise (groups=Cin) conv + BN, linear=True (VPU tap path).
    w_dw = 0.1 * jax.random.normal(k5, (Cout, 1, ksz, ksz), jnp.float32)
    out2 = jax.block_until_ready(conv_block_forward(
        x, w_dw, gamma, beta, alpha, k=ksz, s=stride, p=pad, dw=True, linear=True))
    ref2 = reference_forward(x, w_dw, gamma, beta, alpha, k=ksz, s=stride, p=pad,
                             dw=True, linear=True, conv_dtype=jnp.float32)
    assert jnp.allclose(out2, ref2, atol=3e-2, rtol=3e-2), \
        float(jnp.max(jnp.abs(out2 - ref2)))

    print("KERNEL_OK")
</pallas_src>

<mosaic_0001>
module attributes {stable_mosaic.version = 11 : i64} {
  func.func @_dense_conv_stats_kernel(%arg0: i32, %arg1: i32, %arg2: memref<256x128xbf16, #tpu.memory_space<vmem>>, %arg3: memref<128x128xbf16, #tpu.memory_space<vmem>>, %arg4: memref<256x128xbf16, #tpu.memory_space<vmem>>, %arg5: memref<1x2x128xf32, #tpu.memory_space<vmem>>, %arg6: memref<256x128xf32, #tpu.memory_space<vmem>>) attributes {dimension_semantics = [#tpu.dimension_semantics<parallel>, #tpu.dimension_semantics<arbitrary>], iteration_bounds = array<i64: 2, 1>, scalar_prefetch = 0 : i64, scratch_operands = 1 : i64, tpu.core_type = #tpu.core_type<tc>, window_params = [{transform_indices = @transform_0, window_bounds = array<i64: 256, 128>}, {transform_indices = @transform_1, window_bounds = array<i64: 128, 128>}, {transform_indices = @transform_2, window_bounds = array<i64: 256, 128>}, {transform_indices = @transform_3, window_bounds = array<i64: 1, 2, 128>}]} {
    %c0_i32 = arith.constant 0 : i32
    %0 = arith.cmpi eq, %arg1, %c0_i32 : i32
    %1 = arith.extui %0 : i1 to i32
    %c0_i32_0 = arith.constant 0 : i32
    %2 = arith.cmpi ne, %1, %c0_i32_0 : i32
    scf.if %2 {
      %cst_10 = arith.constant 0.000000e+00 : f32
      %12 = vector.broadcast %cst_10 : f32 to vector<256x128xf32>
      %c0_11 = arith.constant 0 : index
      %c0_12 = arith.constant 0 : index
      %13 = vector.load %arg6[%c0_11, %c0_12] : memref<256x128xf32, #tpu.memory_space<vmem>>, vector<256x128xf32>
      tpu.vector_store %arg6[%c0_11, %c0_12], %12 {strides = array<i32>} : memref<256x128xf32, #tpu.memory_space<vmem>>, vector<256x128xf32>,
    } else {
    }
    %c0 = arith.constant 0 : index
    %c0_1 = arith.constant 0 : index
    %3 = vector.load %arg6[%c0, %c0_1] : memref<256x128xf32, #tpu.memory_space<vmem>>, vector<256x128xf32>
    %c0_2 = arith.constant 0 : index
    %c0_3 = arith.constant 0 : index
    %4 = vector.load %arg2[%c0_2, %c0_3] : memref<256x128xbf16, #tpu.memory_space<vmem>>, vector<256x128xbf16>
    %c0_4 = arith.constant 0 : index
    %c0_5 = arith.constant 0 : index
    %5 = vector.load %arg3[%c0_4, %c0_5] : memref<128x128xbf16, #tpu.memory_space<vmem>>, vector<128x128xbf16>
    %cst = arith.constant dense<0.000000e+00> : vector<256x128xf32>
    %6 = tpu.matmul %4, %5, %cst {dimension_numbers = #tpu.dot_dimension_numbers<[1], [0], [0], [1], [0, 0, 1, 1], [], []>} : vector<256x128xbf16>, vector<128x128xbf16>, vector<256x128xf32> -> vector<256x128xf32>
    %7 = arith.addf %3, %6 : vector<256x128xf32>
    %c0_6 = arith.constant 0 : index
    %c0_7 = arith.constant 0 : index
    %8 = vector.load %arg6[%c0_6, %c0_7] : memref<256x128xf32, #tpu.memory_space<vmem>>, vector<256x128xf32>
    tpu.vector_store %arg6[%c0_6, %c0_7], %7 {strides = array<i32>} : memref<256x128xf32, #tpu.memory_space<vmem>>, vector<256x128xf32>,
    %c0_i32_8 = arith.constant 0 : i32
    %9 = arith.cmpi eq, %arg1, %c0_i32_8 : i32
    %10 = arith.extui %9 : i1 to i32
    %c0_i32_9 = arith.constant 0 : i32
    %11 = arith.cmpi ne, %10, %c0_i32_9 : i32
    scf.if %11 {
      %c0_10 = arith.constant 0 : index
      %c0_11 = arith.constant 0 : index
      %12 = vector.load %arg6[%c0_10, %c0_11] : memref<256x128xf32, #tpu.memory_space<vmem>>, vector<256x128xf32>
      %13 = arith.truncf %12 : vector<256x128xf32> to vector<256x128xbf16>
      %c0_12 = arith.constant 0 : index
      %c0_13 = arith.constant 0 : index
      %14 = vector.load %arg4[%c0_12, %c0_13] : memref<256x128xbf16, #tpu.memory_space<vmem>>, vector<256x128xbf16>
      tpu.vector_store %arg4[%c0_12, %c0_13], %13 {strides = array<i32>} : memref<256x128xbf16, #tpu.memory_space<vmem>>, vector<256x128xbf16>,
      %c0_14 = arith.constant 0 : index
      %c0_15 = arith.constant 0 : index
      %15 = vector.load %arg6[%c0_14, %c0_15] : memref<256x128xf32, #tpu.memory_space<vmem>>, vector<256x128xf32>
      %cst_16 = arith.constant dense<0.000000e+00> : vector<128xf32>
      %16 = vector.multi_reduction <add>, %15, %cst_16 [0] : vector<256x128xf32> to vector<128xf32>
      %17 = vector.shape_cast %16 : vector<128xf32> to vector<1x128xf32>
      %c0_17 = arith.constant 0 : index
      %c0_18 = arith.constant 0 : index
      %c0_19 = arith.constant 0 : index
      %18 = vector.load %arg5[%c0_17, %c0_18, %c0_19] : memref<1x2x128xf32, #tpu.memory_space<vmem>>, vector<1x1x128xf32>
      %19 = vector.shape_cast %18 : vector<1x1x128xf32> to vector<1x128xf32>
      %20 = vector.shape_cast %17 : vector<1x128xf32> to vector<1x1x128xf32>
      tpu.vector_store %arg5[%c0_17, %c0_18, %c0_19], %20 {strides = array<i32>} : memref<1x2x128xf32, #tpu.memory_space<vmem>>, vector<1x1x128xf32>,
      %c0_20 = arith.constant 0 : index
      %c0_21 = arith.constant 0 : index
      %21 = vector.load %arg6[%c0_20, %c0_21] : memref<256x128xf32, #tpu.memory_space<vmem>>, vector<256x128xf32>
      %22 = arith.mulf %21, %21 : vector<256x128xf32>
      %cst_22 = arith.constant dense<0.000000e+00> : vector<128xf32>
      %23 = vector.multi_reduction <add>, %22, %cst_22 [0] : vector<256x128xf32> to vector<128xf32>
      %24 = vector.shape_cast %23 : vector<128xf32> to vector<1x128xf32>
      %c0_23 = arith.constant 0 : index
      %c1 = arith.constant 1 : index
      %c0_24 = arith.constant 0 : index
      %25 = vector.load %arg5[%c0_23, %c1, %c0_24] : memref<1x2x128xf32, #tpu.memory_space<vmem>>, vector<1x1x128xf32>
      %26 = vector.shape_cast %25 : vector<1x1x128xf32> to vector<1x128xf32>
      %27 = vector.shape_cast %24 : vector<1x128xf32> to vector<1x1x128xf32>
      tpu.vector_store %arg5[%c0_23, %c1, %c0_24], %27 {strides = array<i32>} : memref<1x2x128xf32, #tpu.memory_space<vmem>>, vector<1x1x128xf32>,
    } else {
    }
    return
  }
  func.func @transform_0(%arg0: i32, %arg1: i32) -> (i32, i32) {
    %c0_i32 = arith.constant 0 : i32
    return %arg0, %arg1 : i32, i32
  }
  func.func @transform_1(%arg0: i32, %arg1: i32) -> (i32, i32) {
    %c0_i32 = arith.constant 0 : i32
    %c0_i32_0 = arith.constant 0 : i32
    return %arg1, %c0_i32 : i32, i32
  }
  func.func @transform_2(%arg0: i32, %arg1: i32) -> (i32, i32) {
    %c0_i32 = arith.constant 0 : i32
    %c0_i32_0 = arith.constant 0 : i32
    return %arg0, %c0_i32 : i32, i32
  }
  func.func @transform_3(%arg0: i32, %arg1: i32) -> (i32, i32, i32) {
    %c0_i32 = arith.constant 0 : i32
    %c0_i32_0 = arith.constant 0 : i32
    %c0_i32_1 = arith.constant 0 : i32
    return %arg0, %c0_i32, %c0_i32_0 : i32, i32, i32
  }
}

</mosaic_0001>

<bundles_post_ra>
// kernel: tpu_custom_call.1
= control target key start
LH: loop header
LB: loop body
LE: loop exit
PB: predicated region body
PF: predicated region fallthrough
CT: control target
= control target key end

     0   :  { %9 = vsyncpa [#allocation4], 0  ;;  %s2251_s0 = inlined_call_operand.hbm [shape: bf16[512,128], index: 0, kind: input, shape index: {}]   ;;  %s2252_s1 = inlined_call_operand.hbm [shape: bf16[128,128], index: 1, kind: input, shape index: {}]   ;;  %s2253_s2 = inlined_call_operand.hbm [shape: bf16[512,128], index: 2, kind: output, shape index: {0}]   ;;  %s2254_s3 = inlined_call_operand.hbm [shape: f32[2,2,128], index: 3, kind: output, shape index: {1}]  }
   0x1   :  { %11 = vsyncpa [#allocation4 + $0x1], 0 }
   0x2   :  { %12 = vsyncpa [#allocation7], 0 }
   0x3   :  { %13 = vsyncpa [#allocation5], 0 }
   0x4   :  { %15 = vsyncpa [#allocation5 + $0x1], 0 }
   0x5   :  { %16 = vsyncpa [#allocation10], 0 }
   0x6   :  { %18 = vsyncpa [#allocation10 + $0x1], 0  ;;  %s1858_s12 = smov 0   ;;  %s1860_s13 = smov 0  }
   0x7   :  { %s1862_s14 = smov 0   ;;  %s1864_s15 = smov 0  }
   0x8   :  { %s1866_s16 = smov 0   ;;  %s1868_s17 = smov 0  }
   0x9 LB: > { %s1253_s18 = sadd.s32 4294967295, %s1828_s17   ;;  %s1254_s19 = sadd.s32 4294967294, %s1828_s17   ;;  %s1828_s17 = sphi %s1868_s17, %s24_s17   ;;  %s1824_s16 = sphi %s1866_s16, %s2278_s16   ;;  %s1820_s15 = sphi %s1864_s15, %s2277_s15   ;;  %s1816_s14 = sphi %s1862_s14, %s2276_s14   ;;  %s1812_s13 = sphi %s1860_s13, %s2275_s13   ;;  %s1808_s12 = sphi %s1858_s12, %s2274_s12  }
   0xa   : > { %p58_p0 = scmp.ne.s32.totalorder %s1812_s13, %s1808_s12  ;;  %p1892_p1 = scmp.eq.s32.totalorder %s1253_s18, 0 }
   0xb   : > { %p1896_p2 = scmp.eq.s32.totalorder %s1253_s18, 1  ;;  %p114_p3 = scmp.eq.s32.totalorder %s1254_s19, 1 }
   0xc   : > { %s2259_s20 = scalar_select %p1892_p1, 1, 0 }
   0xd   : > { %s2260_s21 = scalar_select %p1896_p2, 1, 0 }
   0xe   : > { %p1902_p4 = por %p1892_p1, %p58_p0  ;;  %p1255_p5 = scmp.ge.s32.totalorder %s1828_s17, 1 }
   0xf   : > { %p1907_p6 = por %p114_p3, %p58_p0  ;;  %p147_p7 = scmp.lt.s32.totalorder %s1828_s17, 3 }
  0x10   : > { %s2261_s22 = scalar_select %p1902_p4, 1, 0 }
  0x11   : > { %s2262_s23 = scalar_select %p1907_p6, 1, 0 }
  0x12   : > { %p1912_p8 = pnand %p1255_p5, %p147_p7  ;;  %s1830_s25 = smov [#allocation6]  }
  0x13   : > { %s162_s26 = sshll.u32 %s1830_s25, 4  ;;  %s36_s28 = sadd.s32 1, %s1824_s16  ;;  %s163_s26 = int_to_ptr.vmem [resolvable:$true] %s162_s26 }
  0x14   : > { %s2263_s24 = scalar_select %p1912_p8, 1, 0 }
  0x15   : > { %p1556_p9 = pneg %p1912_p8  ;;  %s1652_s4 = scalar_lea.hbm %s2252_s1, 1024 }
  0x16   : > { %p1653_p12 = scmp.ne.s32.totalorder %s2252_s1, %s1652_s4  ;;  %p1659_p5 = scmp.lt.u32.totalorder %s1652_s4, %s2252_s1 }
  0x17   : > { %p1921_p11 = pnand %p1556_p9, %p1892_p1 }
  0x19   : > { %p1654_p13 = pneg %p1921_p11 }
  0x1b   : > { %p1655_p0 = pnand %p1654_p13, %p1653_p12 }
  0x1d   : > { %p1656_p3 = pneg %p1655_p0 }
  0x1f   : > { %p1661_p7 = pnand %p1659_p5, %p1656_p3 }
  0x21   : > { %1664 = shalt.err (!%p1661_p7)
}
  0x22   : > { %s1665_s9 = scalar_lea.vmem %s163_s26, 1024  ;;  %p1673_p1 = scmp.lt.s32.totalorder %s163_s26, %s163_s26 }
  0x23   : > { %p1666_p9 = scmp.ne.s32.totalorder %s163_s26, %s1665_s9  ;;  %p1674_p4 = scmp.lt.s32.totalorder %s1665_s9, %s1665_s9 }
  0x25   : > { %p1668_p10 = pnand %p1666_p9, %p1654_p13  ;;  %p1675_p8 = por %p1674_p4, %p1673_p1 }
  0x27   : > { %p1669_p6 = pneg %p1668_p10 }
  0x29   : > { %p1676_p2 = pnand %p1675_p8, %p1669_p6 }
  0x2b   : > { %1679 = shalt.err (!%p1676_p2)
}
  0x2c   : > { %s1831_s10 = smov 64   ;;  %s1832_s11 = smov 4  }
  0x2d   : > { %1559 = dma.hbm_to_vmem [thread:$0]  (!%p1921_p11), %s2252_s1, 1024, %s163_s26, [#allocation7], %s1831_s10, %s1831_s10, %s1832_s11  }
  0x2e   : > { %p38_p1 = scmp.ge.s32.totalorder %s36_s28, 2  ;;  %s45_s25 = sadd.s32 1, %s1816_s14 }
  0x2f   : > { %p52_p2 = scmp.ne.s32.totalorder %s1816_s14, %s1812_s13  ;;  %p53_p4 = scmp.eq.s32.totalorder %s1828_s17, 0 }
  0x30   : > { %s2280_s28 = smov (%p38_p1, %s36_s28), 0  ;;  %p2266_p8 = scmp.ne.s32.totalorder %s2260_s21, 0 }
  0x31   : > { %p1951_p6 = por %p53_p4, %p52_p2  ;;  %s40_s30 = ssub.s32 %s1824_s16, %s2280_s28 }
  0x32   : > { %p1957_p10 = por %p2266_p8, %p52_p2  ;;  %p1572_p12 = scmp.lt.s32.totalorder %s1828_s17, 2 }
  0x33   : > { %p43_p11 = scmp.eq.s32.totalorder %s40_s30, 0  ;;  %s176_s26 = sand.u32 1, %s1816_s14  }
  0x34   : > { %s1258_s4 = sshll.u32 %s176_s26, 7  ;;  %s1329_s6 = sshll.u32 %s1824_s16, 11 }
  0x35   : > { %s1966_s5 = scalar_select %p43_p11, %s1816_s14, %s45_s25  }
  0x36   : > { %s1972_s9 = scalar_lea.hbm %s2251_s0, %s1329_s6  ;;  %s180_s21 = scalar_lea.vmem [#allocation3], %s1258_s4 }
  0x37   : > { %s188_s18 = sshll.u32 %s180_s21, 4  ;;  %p1978_p13 = pnand %p1572_p12, %p1951_p6  ;;  %s1974_s18 = int_to_ptr.vmem [resolvable:$true] %s188_s18 }
  0x38   : > { %s1982_s25 = scalar_lea.sflag [#allocation4], %s176_s26  ;;  %s1680_s30 = scalar_lea.hbm %s1972_s9, 2048 }
  0x39   : > { %p1681_p0 = scmp.ne.s32.totalorder %s1972_s9, %s1680_s30  ;;  %p1682_p3 = pneg %p1978_p13 }
  0x3a   : > { %s1685_s29 = scalar_lea.hbm %s2251_s0, 4096  ;;  %p1686_p9 = scmp.lt.u32.totalorder %s1972_s9, %s2251_s0 }
  0x3b   : > { %p1683_p5 = pnand %p1682_p3, %p1681_p0  ;;  %p1687_p1 = scmp.lt.u32.totalorder %s1685_s29, %s1680_s30 }
  0x3c   : > { %p1689_p4 = scmp.lt.u32.totalorder %s1680_s30, %s1972_s9 }
  0x3d   : > { %p1684_p7 = pneg %p1683_p5  ;;  %p1688_p2 = por %p1687_p1, %p1686_p9 }
  0x3f   : > { %p1690_p6 = por %p1689_p4, %p1688_p2 }
  0x41   : > { %p1691_p8 = pnand %p1690_p6, %p1684_p7 }
  0x43   : > { %1694 = shalt.err (!%p1691_p8)
}
  0x44   : > { %s1695_s26 = scalar_lea.vmem %s1974_s18, 2048  ;;  %s1833_s21 = smov [#allocation3]  }
  0x45   : > { %p1696_p12 = scmp.ne.s32.totalorder %s1974_s18, %s1695_s26  ;;  %s1700_s4 = sshll.u32 %s1833_s21, 4  ;;  %s1701_s4 = int_to_ptr.vmem [resolvable:$false] %s1700_s4 }
  0x46   : > { %s1702_s6 = scalar_lea.vmem %s1701_s4, 4096  ;;  %p1703_p5 = scmp.lt.s32.totalorder %s1974_s18, %s1701_s4 }
  0x47   : > { %p1698_p11 = pnand %p1696_p12, %p1682_p3  ;;  %p1704_p9 = scmp.lt.s32.totalorder %s1702_s6, %s1695_s26 }
  0x49   : > { %p1699_p0 = pneg %p1698_p11  ;;  %p1705_p1 = por %p1704_p9, %p1703_p5 }
  0x4b   : > { %p1706_p2 = pnand %p1705_p1, %p1699_p0 }
  0x4d   : > { %1709 = shalt.err (!%p1706_p2)
}
  0x4e   : > { %1563 = dma.hbm_to_vmem [thread:$0]  (!%p1978_p13), %s1972_s9, 2048, %s1974_s18, %s1982_s25, %s1831_s10, %s1831_s10, %s1832_s11  }
  0x4f   : > { %p2269_p3 = scmp.ne.s32.totalorder %s2263_s24, 0 }
  0x50   : > { %s2016_s30 = sand.u32 (!%p2269_p3), 1, %s1812_s13   ;;  %p2270_p7 = scmp.ne.s32.totalorder (!%p2269_p3), %s2261_s22, 0 }
  0x51   : > { %200 = sbr.rel (%p2269_p3) target bundleno = 441 (0x1b9), region = 28  ;;  %s1262_s29 = sshll.u32 (!%p2269_p3), %s2016_s30, 7 }
  0x52   : > { %s203_s7 = scalar_lea.sflag (!%p2269_p3), [#allocation4], %s2016_s30  ;;  %s2022_s19 = scalar_lea.vmem (!%p2269_p3), [#allocation3], %s1262_s29 }
  0x58   : > { %1791 = dma.done.wait (%p2270_p7), %s203_s7, 2048  }
  0x59   : > { %1793 = vsyncadd (%p2270_p7), %s203_s7, 4294965248  ;;  %p2271_p13 = scmp.ne.s32.totalorder %s2259_s20, 0 }
  0x5b   : > { %1795 = dma.done.wait (%p2271_p13), [#allocation7], 1024  }
  0x5c   : > { %1797 = vsyncadd (%p2271_p13), [#allocation7], 4294966272  ;;  %v1628_v0 = vld [vmem:[#allocation6] sm:$0xff]   ;;  %v1629_v1 = vld [vmem:[#allocation6 + $0x8] sm:$0xff]   ;;  %s2062_s20 = scalar_lea.vmem [#allocation8], %s1262_s29  ;;  %s1362_s22 = sshll.u32 %s1820_s15, 11 }
  0x5d   : > { %1482 = vmatprep.subr.bf16.mxu0 %v1628_v0  ;;  %1530 = vmatprep.subr.bf16.mxu1 %v1628_v0  ;;  %v1630_v2 = vld [vmem:[#allocation6 + $0x10] sm:$0xff]   ;;  %v1631_v3 = vld [vmem:[#allocation6 + $0x18] sm:$0xff]   ;;  %v1636_v4 = vld [vmem:[%s2022_s19] sm:$0xff]   ;;  %s1113_s24 = sshll.u32 %s2062_s20, 4  ;;  %s2115_s9 = scalar_lea.hbm %s2253_s2, %s1362_s22  ;;  %s2117_s24 = int_to_ptr.vmem [resolvable:$true] %s1113_s24 }
  0x5e   : > { %1483 = vmatpush3.bf16.msra.mxu0 %v1628_v0  ;;  %1538 = vmatpush3.bf16.msra.mxu1 %v1628_v0  ;;  %v1632_v5 = vld [vmem:[#allocation6 + $0x20] sm:$0xff]   ;;  %v1633_v6 = vld [vmem:[#allocation6 + $0x28] sm:$0xff]   ;;  %v1634_v8 = vld [vmem:[#allocation6 + $0x30] sm:$0xff]   ;;  %s1095_s18 = scalar_lea.sflag [#allocation5], %s2016_s30  ;;  %s1710_s25 = scalar_lea.vmem %s2117_s24, 2048 }
  0x5f   : > { %1484 = vmatprep.subr.bf16.mxu0 %v1629_v1  ;;  %1531 = vmatprep.subr.bf16.mxu1 %v1629_v1  ;;  %v1644_v7 = vld [vmem:[%s2022_s19 + $0x40] sm:$0xff]   ;;  %v1635_v9 = vld [vmem:[#allocation6 + $0x38] sm:$0xff]   ;;  %v1637_v10 = vld [vmem:[%s2022_s19 + $0x8] sm:$0xff]   ;;  %p1711_p4 = scmp.ne.s32.totalorder %s2117_s24, %s1710_s25  ;;  %s1834_s8 = smov [#allocation8]  }
  0x60   : > { %1498 = vmatprep.mubr.bf16.mxu0 %v1636_v4  ;;  %1514 = vmatprep.mubr.bf16.mxu1 %v1644_v7  ;;  %v1645_v11 = vld [vmem:[%s2022_s19 + $0x48] sm:$0xff]   ;;  %v1638_v12 = vld [vmem:[%s2022_s19 + $0x10] sm:$0xff]   ;;  %v1639_v14 = vld [vmem:[%s2022_s19 + $0x18] sm:$0xff]   ;;  %s1714_s26 = sshll.u32 %s1834_s8, 4  ;;  %s1715_s26 = int_to_ptr.vmem [resolvable:$false] %s1714_s26 }
  0x61   : > { %v1646_v13 = vld [vmem:[%s2022_s19 + $0x50] sm:$0xff]   ;;  %v1647_v15 = vld [vmem:[%s2022_s19 + $0x58] sm:$0xff]   ;;  %v1640_v16 = vld [vmem:[%s2022_s19 + $0x20] sm:$0xff]   ;;  %p1712_p6 = pnand %p1711_p4, %p1957_p10  ;;  %s1716_s21 = scalar_lea.vmem %s1715_s26, 4096 }
  0x62   : > { %1485 = vmatpush3.bf16.msra.mxu0 %v1629_v1  ;;  %1539 = vmatpush3.bf16.msra.mxu1 %v1629_v1  ;;  %v1648_v17 = vld [vmem:[%s2022_s19 + $0x60] sm:$0xff]   ;;  %v1641_v18 = vld [vmem:[%s2022_s19 + $0x28] sm:$0xff]   ;;  %v1642_v20 = vld [vmem:[%s2022_s19 + $0x30] sm:$0xff]   ;;  %p1717_p12 = scmp.lt.s32.totalorder %s2117_s24, %s1715_s26  ;;  %p1718_p11 = scmp.lt.s32.totalorder %s1716_s21, %s1710_s25 }
  0x63   : > { %1486 = vmatprep.subr.bf16.mxu0 %v1630_v2  ;;  %1532 = vmatprep.subr.bf16.mxu1 %v1630_v2  ;;  %v1649_v19 = vld [vmem:[%s2022_s19 + $0x68] sm:$0xff]   ;;  %v1650_v21 = vld [vmem:[%s2022_s19 + $0x70] sm:$0xff]   ;;  %v1643_v22 = vld [vmem:[%s2022_s19 + $0x38] sm:$0xff]   ;;  %p1713_p8 = pneg %p1712_p6 }
  0x64   : > { %v1651_v23 = vld [vmem:[%s2022_s19 + $0x78] sm:$0xff]   ;;  %p1719_p0 = por %p1718_p11, %p1717_p12 }
  0x66   : > { %1487 = vmatpush3.bf16.msra.mxu0 %v1630_v2  ;;  %1540 = vmatpush3.bf16.msra.mxu1 %v1630_v2  ;;  %p1720_p5 = pnand %p1719_p0, %p1713_p8 }
  0x67   : > { %1488 = vmatprep.subr.bf16.mxu0 %v1631_v3  ;;  %1533 = vmatprep.subr.bf16.mxu1 %v1631_v3 }
  0x6a   : > { %1489 = vmatpush3.bf16.msra.mxu0 %v1631_v3  ;;  %1541 = vmatpush3.bf16.msra.mxu1 %v1631_v3 }
  0x6b   : > { %1490 = vmatprep.subr.bf16.mxu0 %v1632_v5  ;;  %1534 = vmatprep.subr.bf16.mxu1 %v1632_v5 }
  0x6e   : > { %1491 = vmatpush3.bf16.msra.mxu0 %v1632_v5  ;;  %1542 = vmatpush3.bf16.msra.mxu1 %v1632_v5 }
  0x6f   : > { %1492 = vmatprep.subr.bf16.mxu0 %v1633_v6  ;;  %1535 = vmatprep.subr.bf16.mxu1 %v1633_v6 }
  0x72   : > { %1493 = vmatpush3.bf16.msra.mxu0 %v1633_v6  ;;  %1543 = vmatpush3.bf16.msra.mxu1 %v1633_v6 }
  0x73   : > { %1494 = vmatprep.subr.bf16.mxu0 %v1634_v8  ;;  %1536 = vmatprep.subr.bf16.mxu1 %v1634_v8 }
  0x76   : > { %1495 = vmatpush3.bf16.msra.mxu0 %v1634_v8  ;;  %1544 = vmatpush3.bf16.msra.mxu1 %v1634_v8 }
  0x77   : > { %1496 = vmatprep.subr.bf16.mxu0 %v1635_v9  ;;  %1537 = vmatprep.subr.bf16.mxu1 %v1635_v9 }
  0x7a   : > { %1497 = vmatpush3.bf16.msra.mxu0 %v1635_v9  ;;  %1545 = vmatpush3.bf16.msra.mxu1 %v1635_v9 }
  0x7d   : > { %1499 = vmatmul.mubr.bf16.vlgmr.msra.gmra.mrb[0].mxu0 %v1637_v10  ;;  %1515 = vmatmul.mubr.bf16.vlgmr.msra.gmra.mrb[0].mxu1 %v1645_v11 }
  0x7e   : > { %1502 = vmatprep.mubr.bf16.mxu0 %v1638_v12  ;;  %1518 = vmatprep.mubr.bf16.mxu1 %v1646_v13 }
  0x85   : > { %1503 = vmatmul.mubr.bf16.gmra.mrb[4].mxu0 %v1639_v14  ;;  %1519 = vmatmul.mubr.bf16.gmra.mrb[4].mxu1 %v1647_v15 }
  0x86   : > { %1506 = vmatprep.mubr.bf16.mxu0 %v1640_v16  ;;  %1522 = vmatprep.mubr.bf16.mxu1 %v1648_v17 }
  0x8d   : > { %1507 = vmatmul.mubr.bf16.gmra.mrb[8].mxu0 %v1641_v18  ;;  %1523 = vmatmul.mubr.bf16.gmra.mrb[8].mxu1 %v1649_v19 }
  0x8e   : > { %1510 = vmatprep.mubr.bf16.mxu0 %v1642_v20  ;;  %1526 = vmatprep.mubr.bf16.mxu1 %v1650_v21 }
  0x95   : > { %1511 = vmatmul.mubr.bf16.gmra.mrb[12].mxu0 %v1643_v22  ;;  %1527 = vmatmul.mubr.bf16.gmra.mrb[12].mxu1 %v1651_v23 }
 0x150   : > { %v1500_v24 = vpop.f32.mrb[0].mxu0  ;;  %v2048_v25 = vpop.f32.mrb[0].mxu1 }
 0x151   : > { %v536_v26 = vpop.f32.mrb[1].mxu0  ;;  %v2050_v27 = vpop.f32.mrb[1].mxu1  ;;  %v1026_v39 = vmul.f32 %v1500_v24, %v1500_v24 }
 0x152   : > { %v1501_v28 = vpop.f32.mrb[2].mxu0  ;;  %v2052_v29 = vpop.f32.mrb[2].mxu1  ;;  %v1024_v30 = vmul.f32 %v536_v26, %v536_v26 }
 0x153   : > { %v1371_v31 = vpack.c.bf16 %v1501_v28, %v1500_v24  ;;  %v539_v32 = vpop.f32.mrb[3].mxu0  ;;  %v1411_v33 = vpack.c.bf16 %v2052_v29, %v2048_v25  ;;  %v2056_v34 = vpop.f32.mrb[3].mxu1  ;;  %v1027_v42 = vmul.f32 %v1501_v28, %v1501_v28 }
 0x154   : > { %v1366_v35 = vpack.c.bf16 %v539_v32, %v536_v26  ;;  %v954_v36 = vadd.f32 %v539_v32, %v536_v26  ;;  %v1025_v37 = vmul.f32 %v539_v32, %v539_v32  ;;  %v1406_v38 = vpack.c.bf16 %v2056_v34, %v2050_v27 }
 0x155   : > { %1443 = vst [vmem:[%s2062_s20 + $0x8] sm:$0xff] %v1371_v31   ;;  %1451 = vst [vmem:[%s2062_s20 + $0x48] sm:$0xff] %v1411_v33  }
 0x156   : > { %1367 = vst [vmem:[%s2062_s20] sm:$0xff] %v1366_v35   ;;  %v955_v40 = vadd.f32 %v1500_v24, %v954_v36  ;;  %v1056_v41 = vadd.f32 %v1025_v37, %v1024_v30  ;;  %1450 = vst [vmem:[%s2062_s20 + $0x40] sm:$0xff] %v1406_v38  }
 0x158   : > { %v1057_v43 = vadd.f32 %v1056_v41, %v1026_v39  ;;  %v1504_v44 = vpop.f32.mrb[4].mxu0  ;;  %v956_v45 = vadd.f32 %v1501_v28, %v955_v40  ;;  %v2068_v46 = vpop.f32.mrb[4].mxu1 }
 0x159   : > { %v552_v47 = vpop.f32.mrb[5].mxu0  ;;  %v2070_v48 = vpop.f32.mrb[5].mxu1  ;;  %v1030_v63 = vmul.f32 %v1504_v44, %v1504_v44 }
 0x15a   : > { %v957_v49 = vadd.f32 %v956_v45, %v552_v47  ;;  %v1028_v50 = vmul.f32 %v552_v47, %v552_v47  ;;  %v1058_v51 = vadd.f32 %v1057_v43, %v1027_v42  ;;  %v1505_v52 = vpop.f32.mrb[6].mxu0  ;;  %v2072_v53 = vpop.f32.mrb[6].mxu1 }
 0x15b   : > { %v1381_v54 = vpack.c.bf16 %v1505_v52, %v1504_v44  ;;  %v555_v55 = vpop.f32.mrb[7].mxu0  ;;  %v1421_v56 = vpack.c.bf16 %v2072_v53, %v2068_v46  ;;  %v2076_v57 = vpop.f32.mrb[7].mxu1  ;;  %v1031_v2 = vmul.f32 %v1505_v52, %v1505_v52 }
 0x15c   : > { %v1059_v58 = vadd.f32 %v1058_v51, %v1028_v50  ;;  %v1376_v59 = vpack.c.bf16 %v555_v55, %v552_v47  ;;  %v958_v60 = vadd.f32 %v957_v49, %v555_v55  ;;  %v1029_v61 = vmul.f32 %v555_v55, %v555_v55 }
 0x15d   : > { %1445 = vst [vmem:[%s2062_s20 + $0x18] sm:$0xff] %v1381_v54   ;;  %1453 = vst [vmem:[%s2062_s20 + $0x58] sm:$0xff] %v1421_v56   ;;  %v1416_v62 = vpack.c.bf16 %v2076_v57, %v2070_v48 }
 0x15e   : > { %1444 = vst [vmem:[%s2062_s20 + $0x10] sm:$0xff] %v1376_v59   ;;  %v959_v0 = vadd.f32 %v1504_v44, %v958_v60  ;;  %v1060_v1 = vadd.f32 %v1059_v58, %v1029_v61  ;;  %v1040_v61 = vmul.f32 %v2050_v27, %v2050_v27 }
 0x15f   : > { %1452 = vst [vmem:[%s2062_s20 + $0x50] sm:$0xff] %v1416_v62  }
 0x160   : > { %v1061_v3 = vadd.f32 %v1060_v1, %v1030_v63  ;;  %v1508_v4 = vpop.f32.mrb[8].mxu0  ;;  %v960_v5 = vadd.f32 %v1505_v52, %v959_v0  ;;  %v2084_v6 = vpop.f32.mrb[8].mxu1 }
 0x161   : > { %v568_v7 = vpop.f32.mrb[9].mxu0  ;;  %v2086_v8 = vpop.f32.mrb[9].mxu1  ;;  %v1034_v23 = vmul.f32 %v1508_v4, %v1508_v4 }
 0x162   : > { %v961_v9 = vadd.f32 %v960_v5, %v568_v7  ;;  %v1032_v10 = vmul.f32 %v568_v7, %v568_v7  ;;  %v1062_v11 = vadd.f32 %v1061_v3, %v1031_v2  ;;  %v1509_v12 = vpop.f32.mrb[10].mxu0  ;;  %v2088_v13 = vpop.f32.mrb[10].mxu1 }
 0x163   : > { %v1391_v14 = vpack.c.bf16 %v1509_v12, %v1508_v4  ;;  %v571_v15 = vpop.f32.mrb[11].mxu0  ;;  %v1431_v16 = vpack.c.bf16 %v2088_v13, %v2084_v6  ;;  %v2092_v17 = vpop.f32.mrb[11].mxu1  ;;  %v1035_v28 = vmul.f32 %v1509_v12, %v1509_v12 }
 0x164   : > { %v1063_v18 = vadd.f32 %v1062_v11, %v1032_v10  ;;  %v1386_v19 = vpack.c.bf16 %v571_v15, %v568_v7  ;;  %v962_v20 = vadd.f32 %v961_v9, %v571_v15  ;;  %v1033_v21 = vmul.f32 %v571_v15, %v571_v15 }
 0x165   : > { %1447 = vst [vmem:[%s2062_s20 + $0x28] sm:$0xff] %v1391_v14   ;;  %1455 = vst [vmem:[%s2062_s20 + $0x68] sm:$0xff] %v1431_v16   ;;  %v1426_v22 = vpack.c.bf16 %v2092_v17, %v2086_v8 }
 0x166   : > { %1446 = vst [vmem:[%s2062_s20 + $0x20] sm:$0xff] %v1386_v19   ;;  %v963_v24 = vadd.f32 %v1508_v4, %v962_v20  ;;  %v1064_v26 = vadd.f32 %v1063_v18, %v1033_v21 }
 0x167   : > { %1454 = vst [vmem:[%s2062_s20 + $0x60] sm:$0xff] %v1426_v22  }
 0x168   : > { %v1065_v30 = vadd.f32 %v1064_v26, %v1034_v23  ;;  %v1512_v31 = vpop.f32.mrb[12].mxu0  ;;  %v964_v32 = vadd.f32 %v1509_v12, %v963_v24  ;;  %v2100_v33 = vpop.f32.mrb[12].mxu1 }
 0x169   : > { %v584_v35 = vpop.f32.mrb[13].mxu0  ;;  %v2102_v36 = vpop.f32.mrb[13].mxu1  ;;  %v1038_v54 = vmul.f32 %v1512_v31, %v1512_v31 }
 0x16a   : > { %v965_v37 = vadd.f32 %v964_v32, %v584_v35  ;;  %v1036_v38 = vmul.f32 %v584_v35, %v584_v35  ;;  %v1066_v39 = vadd.f32 %v1065_v30, %v1035_v28  ;;  %v1513_v40 = vpop.f32.mrb[14].mxu0  ;;  %v2106_v41 = vpop.f32.mrb[14].mxu1 }
 0x16b   : > { %v1401_v42 = vpack.c.bf16 %v1513_v40, %v1512_v31  ;;  %v587_v43 = vpop.f32.mrb[15].mxu0  ;;  %v1441_v44 = vpack.c.bf16 %v2106_v41, %v2100_v33  ;;  %v2110_v45 = vpop.f32.mrb[15].mxu1  ;;  %v1039_v58 = vmul.f32 %v1513_v40, %v1513_v40 }
 0x16c   : > { %v1067_v47 = vadd.f32 %v1066_v39, %v1036_v38  ;;  %v1396_v49 = vpack.c.bf16 %v587_v43, %v584_v35  ;;  %v966_v50 = vadd.f32 %v965_v37, %v587_v43  ;;  %v1037_v51 = vmul.f32 %v587_v43, %v587_v43 }
 0x16d   : > { %1449 = vst [vmem:[%s2062_s20 + $0x38] sm:$0xff] %v1401_v42   ;;  %1457 = vst [vmem:[%s2062_s20 + $0x78] sm:$0xff] %v1441_v44   ;;  %v1436_v52 = vpack.c.bf16 %v2110_v45, %v2102_v36 }
 0x16e   : > { %1448 = vst [vmem:[%s2062_s20 + $0x30] sm:$0xff] %v1396_v49   ;;  %v967_v55 = vadd.f32 %v1512_v31, %v966_v50  ;;  %v1068_v56 = vadd.f32 %v1067_v47, %v1037_v51 }
 0x16f   : > { %1456 = vst [vmem:[%s2062_s20 + $0x70] sm:$0xff] %v1436_v52  }
 0x170   : > { %v1069_v59 = vadd.f32 %v1068_v56, %v1038_v54  ;;  %v968_v60 = vadd.f32 %v1513_v40, %v967_v55 }
 0x171   : > { %1723 = shalt.err (!%p1720_p5)
}
 0x172   : > { %s1724_s4 = scalar_lea.hbm %s2115_s9, 2048  ;;  %s1728_s7 = scalar_lea.hbm %s2253_s2, 4096 }
 0x173   : > { %p1725_p9 = scmp.ne.s32.totalorder %s2115_s9, %s1724_s4  ;;  %p1729_p3 = scmp.lt.u32.totalorder %s2115_s9, %s2253_s2 }
 0x174   : > { %p1730_p7 = scmp.lt.u32.totalorder %s1728_s7, %s1724_s4  ;;  %p1732_p4 = scmp.lt.u32.totalorder %s1724_s4, %s2115_s9 }
 0x175   : > { %p1726_p1 = pnand %p1725_p9, %p1957_p10 }
 0x176   : > { %p1731_p13 = por %p1730_p7, %p1729_p3 }
 0x177   : > { %p1727_p2 = pneg %p1726_p1 }
 0x178   : > { %p1733_p6 = por %p1732_p4, %p1731_p13 }
 0x17a   : > { %p1734_p8 = pnand %p1733_p6, %p1727_p2 }
 0x17c   : > { %1737 = shalt.err (!%p1734_p8)
}
 0x17d   : > { %s1835_s22 = smov 64   ;;  %s1836_s10 = smov 4   ;;  %v969_v62 = vadd.f32 %v968_v60, %v2050_v27  ;;  %v1070_v63 = vadd.f32 %v1069_v59, %v1039_v58  ;;  %v1041_v2 = vmul.f32 %v2056_v34, %v2056_v34  ;;  %v1042_v3 = vmul.f32 %v2048_v25, %v2048_v25 }
 0x17e   : > { %1552 = dma.vmem_to_hbm [thread:$0]  (%p1957_p10), %s2117_s24, 2048, %s2115_s9, %s1095_s18, %s1835_s22, %s1835_s22, %s1836_s10   ;;  %v1043_v7 = vmul.f32 %v2052_v29, %v2052_v29  ;;  %v1044_v27 = vmul.f32 %v2070_v48, %v2070_v48  ;;  %v1045_v15 = vmul.f32 %v2076_v57, %v2076_v57  ;;  %v1049_v24 = vmul.f32 %v2092_v17, %v2092_v17 }
 0x17f   : > { %v1071_v0 = vadd.f32 %v1070_v63, %v1040_v61  ;;  %v970_v1 = vadd.f32 %v969_v62, %v2056_v34  ;;  %v1054_v38 = vmul.f32 %v2100_v33, %v2100_v33  ;;  %v1055_v40 = vmul.f32 %v2106_v41, %v2106_v41  ;;  %s1265_s24 = sshll.u32 %s2016_s30, 1  ;;  %s1326_s11 = sshll.u32 %s1820_s15, 5 }
 0x180   : > { %s237_s9 = scalar_lea.vmem [#allocation9], %s1265_s24  ;;  %s2202_s26 = scalar_lea.hbm %s2254_s3, %s1326_s11 }
 0x181   : > { %v971_v4 = vadd.f32 %v2048_v25, %v970_v1  ;;  %v1072_v5 = vadd.f32 %v1071_v0, %v1041_v2  ;;  %v1046_v25 = vmul.f32 %v2068_v46, %v2068_v46  ;;  %s1129_s18 = sshll.u32 %s237_s9, 4  ;;  %s1100_s21 = scalar_lea.sflag [#allocation10], %s2016_s30  ;;  %s2204_s18 = int_to_ptr.vmem [resolvable:$true] %s1129_s18 }
 0x182   : > { %s1738_s4 = scalar_lea.vmem %s2204_s18, 32  ;;  %s1837_s15 = smov [#allocation9]  }
 0x183   : > { %v1073_v9 = vadd.f32 %v1072_v5, %v1042_v3  ;;  %v972_v10 = vadd.f32 %v2052_v29, %v971_v4  ;;  %v1047_v29 = vmul.f32 %v2072_v53, %v2072_v53  ;;  %p1739_p12 = scmp.ne.s32.totalorder %s2204_s18, %s1738_s4  ;;  %s1742_s6 = sshll.u32 %s1837_s15, 4  ;;  %s1743_s6 = int_to_ptr.vmem [resolvable:$false] %s1742_s6 }
 0x184   : > { %s1744_s29 = scalar_lea.vmem %s1743_s6, 64  ;;  %p1745_p5 = scmp.lt.s32.totalorder %s2204_s18, %s1743_s6 }
 0x185   : > { %v973_v11 = vadd.f32 %v972_v10, %v2070_v48  ;;  %v1074_v12 = vadd.f32 %v1073_v9, %v1043_v7  ;;  %v1048_v48 = vmul.f32 %v2086_v8, %v2086_v8  ;;  %p1740_p11 = pnand %p1739_p12, %p1957_p10  ;;  %p1746_p9 = scmp.lt.s32.totalorder %s1744_s29, %s1738_s4 }
 0x187   : > { %v1075_v14 = vadd.f32 %v1074_v12, %v1044_v27  ;;  %v974_v34 = vadd.f32 %v973_v11, %v2076_v57  ;;  %p1741_p0 = pneg %p1740_p11  ;;  %p1747_p1 = por %p1746_p9, %p1745_p5 }
 0x189   : > { %v975_v16 = vadd.f32 %v2068_v46, %v974_v34  ;;  %v1076_v18 = vadd.f32 %v1075_v14, %v1045_v15  ;;  %v1050_v46 = vmul.f32 %v2084_v6, %v2084_v6  ;;  %p1748_p2 = pnand %p1747_p1, %p1741_p0 }
 0x18b   : > { %v1077_v19 = vadd.f32 %v1076_v18, %v1046_v25  ;;  %v976_v20 = vadd.f32 %v2072_v53, %v975_v16  ;;  %v1051_v53 = vmul.f32 %v2088_v13, %v2088_v13 }
 0x18d   : > { %v977_v21 = vadd.f32 %v976_v20, %v2086_v8  ;;  %v1078_v22 = vadd.f32 %v1077_v19, %v1047_v29  ;;  %v1052_v8 = vmul.f32 %v2102_v36, %v2102_v36 }
 0x18f   : > { %v1079_v23 = vadd.f32 %v1078_v22, %v1048_v48  ;;  %v978_v57 = vadd.f32 %v977_v21, %v2092_v17 }
 0x191   : > { %v979_v26 = vadd.f32 %v2084_v6, %v978_v57  ;;  %v1080_v28 = vadd.f32 %v1079_v23, %v1049_v24  ;;  %v1053_v6 = vmul.f32 %v2110_v45, %v2110_v45 }
 0x193   : > { %v1081_v30 = vadd.f32 %v1080_v28, %v1050_v46  ;;  %v980_v31 = vadd.f32 %v2088_v13, %v979_v26 }
 0x195   : > { %v981_v32 = vadd.f32 %v980_v31, %v2102_v36  ;;  %v1082_v35 = vadd.f32 %v1081_v30, %v1051_v53 }
 0x197   : > { %v1083_v17 = vadd.f32 %v1082_v35, %v1052_v8  ;;  %v982_v37 = vadd.f32 %v981_v32, %v2110_v45 }
 0x199   : > { %v983_v39 = vadd.f32 %v2100_v33, %v982_v37  ;;  %v1084_v13 = vadd.f32 %v1083_v17, %v1053_v6 }
 0x19b   : > { %v984_v42 = vadd.f32 %v2106_v41, %v983_v39  ;;  %v1085_v36 = vadd.f32 %v1084_v13, %v1054_v38 }
 0x19d   : > { %v985_v43 = vrot.slane %v984_v42, 4  ;;  %v1086_v44 = vadd.f32 %v1085_v36, %v1055_v40 }
 0x19f   : > { %v986_v47 = vadd.f32 %v985_v43, %v984_v42  ;;  %v1087_v49 = vrot.slane %v1086_v44, 4 }
 0x1a1   : > { %v987_v50 = vrot.slane %v986_v47, 2  ;;  %v1088_v45 = vadd.f32 %v1087_v49, %v1086_v44 }
 0x1a3   : > { %v988_v51 = vadd.f32 %v987_v50, %v986_v47  ;;  %v1089_v52 = vrot.slane %v1088_v45, 2 }
 0x1a5   : > { %v989_v33 = vrot.slane %v988_v51, 1  ;;  %v1090_v54 = vadd.f32 %v1089_v52, %v1088_v45 }
 0x1a7   : > { %v990_v55 = vadd.f32 %v989_v33, %v988_v51  ;;  %v1091_v56 = vrot.slane %v1090_v54, 1 }
 0x1a9   : > { %991 = vst [vmem:[%s237_s9] sm:$0x1] %v990_v55  ;;  %v1092_v41 = vadd.f32 %v1091_v56, %v1090_v54 }
 0x1ab   : > { %1093 = vst [vmem:[%s237_s9 + $0x1] sm:$0x1] %v1092_v41 }
 0x1ac   : > { %1751 = shalt.err (!%p1748_p2)
}
 0x1ad   : > { %s1752_s30 = scalar_lea.hbm %s2202_s26, 32  ;;  %s1756_s20 = scalar_lea.hbm %s2254_s3, 64 }
 0x1ae   : > { %p1753_p3 = scmp.ne.s32.totalorder %s2202_s26, %s1752_s30  ;;  %p1757_p4 = scmp.lt.u32.totalorder %s2202_s26, %s2254_s3 }
 0x1af   : > { %p1758_p6 = scmp.lt.u32.totalorder %s1756_s20, %s1752_s30  ;;  %p1760_p12 = scmp.lt.u32.totalorder %s1752_s30, %s2202_s26 }
 0x1b0   : > { %p1754_p7 = pnand %p1753_p3, %p1957_p10 }
 0x1b1   : > { %p1759_p8 = por %p1758_p6, %p1757_p4 }
 0x1b2   : > { %p1755_p13 = pneg %p1754_p7 }
 0x1b3   : > { %p1761_p11 = por %p1760_p12, %p1759_p8 }
 0x1b5   : > { %p1762_p0 = pnand %p1761_p11, %p1755_p13 }
 0x1b7   : > { %1765 = shalt.err (!%p1762_p0)
}
 0x1b8   : > { %1553 = dma.vmem_to_hbm [thread:$0]  (%p1957_p10), %s2204_s18, 32, %s2202_s26, %s1100_s21  }
 0x1b9 PF: > { %s1141_s24 = sand.u32 1, %s1808_s12   ;;  %p2272_p5 = scmp.ne.s32.totalorder %s2262_s23, 0 }
 0x1ba   : > { %p2273_p9 = scmp.ge.s32.totalorder %s1828_s17, 2  ;;  %s1142_s11 = scalar_lea.sflag [#allocation5], %s1141_s24 }
 0x1bc   : > { %p1565_p1 = pnand %p2273_p9, %p2272_p5 }
 0x1be   : > { %1799 = dma.done.wait (!%p1565_p1), %s1142_s11, 2048  }
 0x1bf   : > { %1801 = vsyncadd (!%p1565_p1), %s1142_s11, 4294965248  ;;  %s1151_s9 = scalar_lea.sflag [#allocation10], %s1141_s24 }
 0x1c0   : > { %1803 = dma.done.wait (!%p1565_p1), %s1151_s9, 32  }
 0x1c1   : > { %1805 = vsyncadd (!%p1565_p1), %s1151_s9, 4294967264  ;;  %s24_s17 = sadd.s32 1, %s1828_s17   ;;  %s2274_s12 = smov %s1812_s13 }
 0x1c2   : > { %p21_p2 = scmp.ge.s32.totalorder %s24_s17, 4   ;;  %s2275_s13 = smov %s1816_s14 }
 0x1c3   : > { %s2276_s14 = smov %s1966_s5  ;;  %s2277_s15 = smov %s1824_s16 }
 0x1c4   : > { %s2278_s16 = smov %s2280_s28  ;;  %23 = sbr.rel (!%p21_p2) target bundleno = 9 (0x9), region = 103 }
 0x1cb   :  { %1156 = vsyncpa [#allocation4], 1 }
 0x1cc   :  { %1158 = vsyncpa [#allocation4 + $0x1], 1 }
 0x1cd   :  { %1159 = vsyncpa [#allocation7], 1 }
 0x1ce   :  { %1160 = vsyncpa [#allocation5], 1 }
 0x1cf   :  { %1162 = vsyncpa [#allocation5 + $0x1], 1 }
 0x1d0   :  { %1163 = vsyncpa [#allocation10], 1 }
 0x1d1   :  { %1165 = vsyncpa [#allocation10 + $0x1], 1 }

</bundles_post_ra>
